<compile_context>
chip_gen: v7x
topology: tpu7x:2x2x1
jax: 0.10.0
libtpu: 0.0.40
codegen_flags: <defaults>
</compile_context>

<pallas_src>
import math

import jax
import jax.numpy as jnp
from jax.experimental import pallas as pl
from jax.experimental.pallas import tpu as pltpu


def _head_kernel(x_ref, w_ref, shift_ref, o_ref, acc_ref):
    """Fused head: sum-pool over tokens -> bf16 matmul (f32 acc) -> shift -> LeakyReLU.

    Runs over a K grid (channel tiles); acc_ref is a persistent f32 VMEM accumulator.
    """
    k = pl.program_id(0)

    @pl.when(k == 0)
    def _init():
        acc_ref[...] = jnp.zeros_like(acc_ref)

    # Sum over the token axis in f32 (the 1/L mean factor is folded into w_eff).
    pooled = jnp.sum(x_ref[...].astype(jnp.float32), axis=1)            # (B, tk) f32
    # bf16 MXU matmul with f32 accumulation into the VMEM scratch.
    acc_ref[...] += jnp.dot(pooled.astype(jnp.bfloat16), w_ref[...],
                            preferred_element_type=jnp.float32)          # (B, H)

    @pl.when(k == pl.num_programs(0) - 1)
    def _finalize():
        # shift = b1*bn_scale + bn_shift (f32); LeakyReLU(0.1) in f32, then store.
        z = acc_ref[...] + shift_ref[...]
        o_ref[...] = jnp.where(z >= 0.0, z, 0.1 * z)


def ftnet_swin_head(x_tokens, w_eff, shift_eff, *, tk=256):
    """x_tokens: (B, L, C) bf16 backbone tokens -> (B, H) f32 feature 'f'.

    w_eff:     (C, H) bf16  = linear weight with BN scale and 1/L folded in.
    shift_eff: (1, H) f32   = b1*bn_scale + bn_shift.
    """
    B, L, C = x_tokens.shape
    H = w_eff.shape[1]
    assert C % tk == 0, "channel dim must be divisible by the K tile"
    return pl.pallas_call(
        _head_kernel,
        out_shape=jax.ShapeDtypeStruct((B, H), jnp.float32),
        grid_spec=pltpu.PrefetchScalarGridSpec(
            num_scalar_prefetch=0,
            grid=(C // tk,),
            in_specs=[
                pl.BlockSpec((B, L, tk), lambda k: (0, 0, k)),   # token slab (bf16)
                pl.BlockSpec((tk, H), lambda k: (k, 0)),          # weight tile (bf16)
                pl.BlockSpec((1, H), lambda k: (0, 0)),           # folded shift (f32)
            ],
            out_specs=pl.BlockSpec((B, H), lambda k: (0, 0)),
            scratch_shapes=[pltpu.VMEM((B, H), jnp.float32)],
        ),
        # K is a reduction axis (output block index constant across it).
        compiler_params=pltpu.CompilerParams(
            dimension_semantics=("arbitrary",),
        ),
    )(x_tokens, w_eff, shift_eff)


def init_params(key, input_dim=1024, linear=512, class_num=77, num_tokens=49):
    """Parameter init matching ClassBlock.__init__, with BN/bias/1-over-L folding."""
    k_w1, k_bn, k_cls = jax.random.split(key, 3)

    # nn.Linear(input_dim, linear), kaiming_normal_(a=0, mode='fan_out'):
    # std = sqrt(2 / fan_out) = sqrt(2 / linear); bias = 0.
    w1 = jax.random.normal(k_w1, (input_dim, linear), jnp.float32) * math.sqrt(2.0 / linear)
    b1 = jnp.zeros((linear,), jnp.float32)

    # nn.BatchNorm1d(linear): weight ~ N(1, 0.02), bias = 0,
    # running_mean = 0, running_var = 1 (fresh module), eps = 1e-5 (eval mode).
    gamma = 1.0 + 0.02 * jax.random.normal(k_bn, (linear,), jnp.float32)
    beta = jnp.zeros((linear,), jnp.float32)
    running_mean = jnp.zeros((linear,), jnp.float32)
    running_var = jnp.ones((linear,), jnp.float32)
    eps = 1e-5
    inv_std = 1.0 / jnp.sqrt(running_var + eps)
    bn_scale = gamma * inv_std
    bn_shift = beta - running_mean * gamma * inv_std

    # Constant-fold: mean-pool(1/L) + Linear + BN(eval) -> single matmul + shift.
    w_eff = ((w1 * bn_scale[None, :]) / float(num_tokens)).astype(jnp.bfloat16)   # (C, H) bf16
    shift_eff = (b1 * bn_scale + bn_shift).reshape(1, linear).astype(jnp.float32)  # (1, H) f32

    # Classifier nn.Linear(linear, class_num): weight std=0.001, bias=0.
    # Shape fidelity only — NOT used in forward (return_f=True).
    w_cls = 0.001 * jax.random.normal(k_cls, (linear, class_num), jnp.float32)
    b_cls = jnp.zeros((class_num,), jnp.float32)

    # Keep unfolded copies for the reference check.
    return dict(w_eff=w_eff, shift_eff=shift_eff,
                w1=w1, b1=b1, bn_scale=bn_scale, bn_shift=bn_shift,
                w_cls=w_cls, b_cls=b_cls)


if __name__ == "__main__":
    key = jax.random.PRNGKey(0)
    k_param, k_x = jax.random.split(key)

    # Swin-base forward_features on a 224x224 input yields (B, 7*7, 1024) tokens.
    B, L, C = 2, 49, 1024
    LINEAR = 512

    params = init_params(k_param, input_dim=C, linear=LINEAR, class_num=77,
                         num_tokens=L)

    # Backbone tokens streamed to the head in bf16 (halves HBM traffic).
    x_tokens_f32 = jax.random.normal(k_x, (B, L, C), jnp.float32)
    x_tokens = x_tokens_f32.astype(jnp.bfloat16)

    f = ftnet_swin_head(x_tokens, params["w_eff"], params["shift_eff"], tk=256)
    f = jax.block_until_ready(f)
    assert f.shape == (B, LINEAR) and f.dtype == jnp.float32

    # Reference in plain JAX (same eval-mode semantics, same bf16 inputs promoted
    # to f32 so the only delta is MXU rounding of the pooled operand).
    x_q = x_tokens.astype(jnp.float32)
    w_q = params["w_eff"].astype(jnp.float32)
    pooled = jnp.sum(x_q, axis=1)                       # 1/L already folded into w_eff
    z = pooled @ w_q + params["shift_eff"]
    ref = jnp.where(z >= 0.0, z, 0.1 * z)
    assert jnp.allclose(f, ref, atol=1e-2, rtol=1e-2), \
        float(jnp.max(jnp.abs(f - ref)))

    # Sanity check against the fully unfolded f32 math (mean -> Linear -> BN -> LeakyReLU).
    pooled_full = jnp.mean(x_tokens_f32, axis=1)
    z_full = pooled_full @ params["w1"] + params["b1"]
    z_full = z_full * params["bn_scale"] + params["bn_shift"]
    ref_full = jnp.where(z_full >= 0.0, z_full, 0.1 * z_full)
    assert jnp.allclose(f, ref_full, atol=5e-2, rtol=5e-2)

    print("KERNEL_OK")
</pallas_src>

<mosaic_0001>
module attributes {stable_mosaic.version = 11 : i64} {
  func.func @_head_kernel(%arg0: i32, %arg1: memref<2x49x256xbf16, #tpu.memory_space<vmem>>, %arg2: memref<256x512xbf16, #tpu.memory_space<vmem>>, %arg3: memref<1x512xf32, #tpu.memory_space<vmem>>, %arg4: memref<2x512xf32, #tpu.memory_space<vmem>>, %arg5: memref<2x512xf32, #tpu.memory_space<vmem>>) attributes {dimension_semantics = [#tpu.dimension_semantics<arbitrary>], iteration_bounds = array<i64: 4>, scalar_prefetch = 0 : i64, scratch_operands = 1 : i64, tpu.core_type = #tpu.core_type<tc>, window_params = [{transform_indices = @transform_0, window_bounds = array<i64: 2, 49, 256>}, {transform_indices = @transform_1, window_bounds = array<i64: 256, 512>}, {pipeline_mode = #tpu.pipeline_mode<synchronous>, transform_indices = @transform_2, window_bounds = array<i64: 1, 512>}, {pipeline_mode = #tpu.pipeline_mode<synchronous>, transform_indices = @transform_3, window_bounds = array<i64: 2, 512>}]} {
    %c0_i32 = arith.constant 0 : i32
    %0 = arith.cmpi eq, %arg0, %c0_i32 : i32
    %1 = arith.extui %0 : i1 to i32
    %c0_i32_0 = arith.constant 0 : i32
    %2 = arith.cmpi ne, %1, %c0_i32_0 : i32
    scf.if %2 {
      %cst_11 = arith.constant 0.000000e+00 : f32
      %15 = vector.broadcast %cst_11 : f32 to vector<2x512xf32>
      %c0_12 = arith.constant 0 : index
      %c0_13 = arith.constant 0 : index
      %16 = vector.load %arg5[%c0_12, %c0_13] : memref<2x512xf32, #tpu.memory_space<vmem>>, vector<2x512xf32>
      tpu.vector_store %arg5[%c0_12, %c0_13], %15 {strides = array<i32>} : memref<2x512xf32, #tpu.memory_space<vmem>>, vector<2x512xf32>,
    } else {
    }
    %c0 = arith.constant 0 : index
    %c0_1 = arith.constant 0 : index
    %c0_2 = arith.constant 0 : index
    %3 = vector.load %arg1[%c0, %c0_1, %c0_2] : memref<2x49x256xbf16, #tpu.memory_space<vmem>>, vector<2x49x256xbf16>
    %4 = arith.extf %3 : vector<2x49x256xbf16> to vector<2x49x256xf32>
    %cst = arith.constant dense<0.000000e+00> : vector<2x256xf32>
    %5 = vector.multi_reduction <add>, %4, %cst [1] : vector<2x49x256xf32> to vector<2x256xf32>
    %c0_3 = arith.constant 0 : index
    %c0_4 = arith.constant 0 : index
    %6 = vector.load %arg5[%c0_3, %c0_4] : memref<2x512xf32, #tpu.memory_space<vmem>>, vector<2x512xf32>
    %7 = arith.truncf %5 : vector<2x256xf32> to vector<2x256xbf16>
    %c0_5 = arith.constant 0 : index
    %c0_6 = arith.constant 0 : index
    %8 = vector.load %arg2[%c0_5, %c0_6] : memref<256x512xbf16, #tpu.memory_space<vmem>>, vector<256x512xbf16>
    %cst_7 = arith.constant dense<0.000000e+00> : vector<2x512xf32>
    %9 = tpu.matmul %7, %8, %cst_7 {dimension_numbers = #tpu.dot_dimension_numbers<[1], [0], [0], [1], [0, 0, 1, 1], [], []>} : vector<2x256xbf16>, vector<256x512xbf16>, vector<2x512xf32> -> vector<2x512xf32>
    %10 = arith.addf %6, %9 : vector<2x512xf32>
    %c0_8 = arith.constant 0 : index
    %c0_9 = arith.constant 0 : index
    %11 = vector.load %arg5[%c0_8, %c0_9] : memref<2x512xf32, #tpu.memory_space<vmem>>, vector<2x512xf32>
    tpu.vector_store %arg5[%c0_8, %c0_9], %10 {strides = array<i32>} : memref<2x512xf32, #tpu.memory_space<vmem>>, vector<2x512xf32>,
    %c3_i32 = arith.constant 3 : i32
    %12 = arith.cmpi eq, %arg0, %c3_i32 : i32
    %13 = arith.extui %12 : i1 to i32
    %c0_i32_10 = arith.constant 0 : i32
    %14 = arith.cmpi ne, %13, %c0_i32_10 : i32
    scf.if %14 {
      %c0_11 = arith.constant 0 : index
      %c0_12 = arith.constant 0 : index
      %15 = vector.load %arg5[%c0_11, %c0_12] : memref<2x512xf32, #tpu.memory_space<vmem>>, vector<2x512xf32>
      %c0_13 = arith.constant 0 : index
      %c0_14 = arith.constant 0 : index
      %16 = vector.load %arg3[%c0_13, %c0_14] : memref<1x512xf32, #tpu.memory_space<vmem>>, vector<1x512xf32>
      %17 = vector.broadcast %16 : vector<1x512xf32> to vector<2x512xf32>
      %18 = arith.addf %15, %17 : vector<2x512xf32>
      %cst_15 = arith.constant 0.000000e+00 : f32
      %19 = vector.broadcast %cst_15 : f32 to vector<2x512xf32>
      %20 = arith.cmpf oge, %18, %19 : vector<2x512xf32>
      %cst_16 = arith.constant 1.000000e-01 : f32
      %21 = vector.broadcast %cst_16 : f32 to vector<2x512xf32>
      %22 = arith.mulf %21, %18 : vector<2x512xf32>
      %23 = arith.select %20, %18, %22 : vector<2x512xi1>, vector<2x512xf32>
      %c0_17 = arith.constant 0 : index
      %c0_18 = arith.constant 0 : index
      %24 = vector.load %arg4[%c0_17, %c0_18] : memref<2x512xf32, #tpu.memory_space<vmem>>, vector<2x512xf32>
      tpu.vector_store %arg4[%c0_17, %c0_18], %23 {strides = array<i32>} : memref<2x512xf32, #tpu.memory_space<vmem>>, vector<2x512xf32>,
    } else {
    }
    return
  }
  func.func @transform_0(%arg0: i32) -> (i32, i32, i32) {
    %c0_i32 = arith.constant 0 : i32
    %c0_i32_0 = arith.constant 0 : i32
    %c0_i32_1 = arith.constant 0 : i32
    return %c0_i32, %c0_i32_0, %arg0 : i32, i32, i32
  }
  func.func @transform_1(%arg0: i32) -> (i32, i32) {
    %c0_i32 = arith.constant 0 : i32
    %c0_i32_0 = arith.constant 0 : i32
    return %arg0, %c0_i32 : i32, i32
  }
  func.func @transform_2(%arg0: i32) -> (i32, i32) {
    %c0_i32 = arith.constant 0 : i32
    %c0_i32_0 = arith.constant 0 : i32
    %c0_i32_1 = arith.constant 0 : i32
    return %c0_i32, %c0_i32_0 : i32, i32
  }
  func.func @transform_3(%arg0: i32) -> (i32, i32) {
    %c0_i32 = arith.constant 0 : i32
    %c0_i32_0 = arith.constant 0 : i32
    %c0_i32_1 = arith.constant 0 : i32
    return %c0_i32, %c0_i32_0 : i32, i32
  }
}

</mosaic_0001>

<bundles_post_ra>
// kernel: tpu_custom_call.1
= control target key start
LH: loop header
LB: loop body
LE: loop exit
PB: predicated region body
PF: predicated region fallthrough
CT: control target
= control target key end

     0   :  { %8 = vsyncpa [#allocation5], 0  ;;  %s1595_s0 = inlined_call_operand.vmem [shape: bf16[2,49,1024], index: 0, kind: input, shape index: {}]   ;;  %s1596_s1 = inlined_call_operand.hbm [shape: bf16[1024,512], index: 1, kind: input, shape index: {}]   ;;  %s1597_s2 = inlined_call_operand.vmem [shape: f32[1,512], index: 2, kind: input, shape index: {}]   ;;  %s1598_s3 = inlined_call_operand.hbm [shape: f32[2,512], index: 3, kind: output, shape index: {}]  }
   0x1   :  { %10 = vsyncpa [#allocation5 + $0x1], 0 }
   0x2   :  { %11 = vsyncpa [#allocation6], 0  ;;  %s1365_s12 = smov 0   ;;  %s1367_s13 = smov 0  }
   0x3   :  { %s1369_s14 = smov 0   ;;  %s1371_s15 = smov 0  }
   0x4 LB: > { %s1384_s16 = sadd.s32 4294967295, %s1337_s15   ;;  %s1387_s17 = sadd.s32 1, %s1337_s15   ;;  %s1337_s15 = sphi %s1371_s15, %s1604_s15   ;;  %s1333_s14 = sphi %s1369_s14, %s1603_s14   ;;  %s1329_s13 = sphi %s1367_s13, %s1602_s13   ;;  %s1325_s12 = sphi %s1365_s12, %s1601_s12  }
   0x5   : > { %s21_s18 = ssub.s32 %s1337_s15, %s1387_s17  ;;  %s24_s19 = sadd.s32 1, %s1333_s14 }
   0x6   : > { %p22_p0 = scmp.eq.s32.totalorder %s21_s18, 0  ;;  %p31_p1 = scmp.ne.s32.totalorder %s1333_s14, %s1329_s13 }
   0x7   : > { %p32_p2 = scmp.eq.s32.totalorder %s1337_s15, 0  ;;  %p63_p3 = scmp.ne.s32.totalorder %s1329_s13, %s1325_s12 }
   0x8   : > { %s1397_s20 = scalar_select %p22_p0, %s1333_s14, %s24_s19  }
   0x9   : > { %p1399_p4 = por %p32_p2, %p31_p1  ;;  %p64_p5 = scmp.eq.s32.totalorder %s1384_s16, 0 }
   0xa   : > { %p1020_p7 = scmp.ge.s32.totalorder %s1337_s15, 4 }
   0xb   : > { %p1404_p6 = por %p64_p5, %p63_p3 }
   0xc   : > { %128 = sbr.rel (%p1020_p7) target bundleno = 63 (0x3f), region = 20 }
  0x13   : > { %131 = sbr.rel (!%p1399_p4) target bundleno = 37 (0x25), region = 24  ;;  %s133_s23 = sand.u32 (%p1399_p4), 1, %s1333_s14  }
  0x14   : > { %s1099_s24 = sshll.u32 (%p1399_p4), %s1337_s15, 3  ;;  %s1102_s25 = smul.u32 (%p1399_p4), 112, %s133_s23 }
  0x15   : > { %s138_s28 = scalar_lea.vmem (%p1399_p4), %s1595_s0, %s1099_s24 }
  0x16   : > { %v192_v0 = vld [vmem:[%s138_s28] sm:$0xff] (%p1399_p4)  ;;  %s135_s29 = scalar_lea.vmem (%p1399_p4), [#allocation3], %s1102_s25 }
  0x17   : > { %v194_v1 = vld [vmem:[%s138_s28 + $0x20] sm:$0xff] (%p1399_p4)  ;;  %193 = vst [vmem:[%s135_s29] sm:$0xff] (%p1399_p4), %v192_v0 }
  0x18   : > { %v196_v2 = vld [vmem:[%s138_s28 + $0x40] sm:$0xff] (%p1399_p4)  ;;  %195 = vst [vmem:[%s135_s29 + $0x8] sm:$0xff] (%p1399_p4), %v194_v1 }
  0x19   : > { %v198_v3 = vld [vmem:[%s138_s28 + $0x60] sm:$0xff] (%p1399_p4)  ;;  %197 = vst [vmem:[%s135_s29 + $0x10] sm:$0xff] (%p1399_p4), %v196_v2 }
  0x1a   : > { %v200_v4 = vld [vmem:[%s138_s28 + $0x80] sm:$0xff]  ;;  %199 = vst [vmem:[%s135_s29 + $0x18] sm:$0xff] %v198_v3 }
  0x1b   : > { %v202_v5 = vld [vmem:[%s138_s28 + $0xa0] sm:$0xff]  ;;  %201 = vst [vmem:[%s135_s29 + $0x20] sm:$0xff] %v200_v4 }
  0x1c   : > { %203 = vst [vmem:[%s135_s29 + $0x28] sm:$0xff] %v202_v5  ;;  %v204_v6 = vld [vmem:[%s138_s28 + $0xc0] sm:$0xff] }
  0x1d   : > { %v206_v7 = vld [vmem:[%s138_s28 + $0xe0] sm:$0xff]  ;;  %205 = vst [vmem:[%s135_s29 + $0x30] sm:$0xff] %v204_v6 }
  0x1e   : > { %v208_v8 = vld [vmem:[%s138_s28 + $0x100] sm:$0xff]  ;;  %207 = vst [vmem:[%s135_s29 + $0x38] sm:$0xff] %v206_v7 }
  0x1f   : > { %209 = vst [vmem:[%s135_s29 + $0x40] sm:$0xff] %v208_v8  ;;  %v210_v9 = vld [vmem:[%s138_s28 + $0x120] sm:$0xff] }
  0x20   : > { %v212_v10 = vld [vmem:[%s138_s28 + $0x140] sm:$0xff]  ;;  %211 = vst [vmem:[%s135_s29 + $0x48] sm:$0xff] %v210_v9 }
  0x21   : > { %v214_v11 = vld [vmem:[%s138_s28 + $0x160] sm:$0xff]  ;;  %213 = vst [vmem:[%s135_s29 + $0x50] sm:$0xff] %v212_v10 }
  0x22   : > { %215 = vst [vmem:[%s135_s29 + $0x58] sm:$0xff] %v214_v11  ;;  %v216_v12 = vld [vmem:[%s138_s28 + $0x180] sm:$0xff] }
  0x23   : > { %v218_v13 = vld [vmem:[%s138_s28 + $0x1a0] sm:$0xff]  ;;  %217 = vst [vmem:[%s135_s29 + $0x60] sm:$0xff] %v216_v12 }
  0x24   : > { %219 = vst [vmem:[%s135_s29 + $0x68] sm:$0xff] %v218_v13 }
  0x25 PF: > { %s226_s30 = sand.u32 1, %s1333_s14   ;;  %s1101_s4 = sshll.u32 %s1337_s15, 13 }
  0x26   : > { %s1023_s5 = sshll.u32 %s226_s30, 9  ;;  %s1421_s8 = scalar_lea.hbm %s1596_s1, %s1101_s4 }
  0x27   : > { %s230_s9 = scalar_lea.vmem [#allocation4], %s1023_s5  ;;  %s1425_s11 = scalar_lea.sflag [#allocation5], %s226_s30 }
  0x28   : > { %s238_s10 = sshll.u32 %s230_s9, 4  ;;  %s1245_s12 = scalar_lea.hbm %s1421_s8, 8192  ;;  %s1423_s10 = int_to_ptr.vmem [resolvable:$true] %s238_s10 }
  0x29   : > { %p1246_p8 = scmp.ne.s32.totalorder %s1421_s8, %s1245_s12  ;;  %s1249_s23 = scalar_lea.hbm %s1596_s1, 32768 }
  0x2a   : > { %p1250_p11 = scmp.lt.u32.totalorder %s1421_s8, %s1596_s1  ;;  %p1251_p12 = scmp.lt.u32.totalorder %s1249_s23, %s1245_s12 }
  0x2b   : > { %p1247_p9 = pnand %p1246_p8, %p1399_p4  ;;  %p1253_p0 = scmp.lt.u32.totalorder %s1245_s12, %s1421_s8 }
  0x2c   : > { %p1252_p13 = por %p1251_p12, %p1250_p11 }
  0x2d   : > { %p1248_p10 = pneg %p1247_p9 }
  0x2e   : > { %p1254_p1 = por %p1253_p0, %p1252_p13 }
  0x30   : > { %p1255_p2 = pnand %p1254_p1, %p1248_p10 }
  0x32   : > { %1258 = shalt.err (!%p1255_p2)
}
  0x33   : > { %s1259_s26 = scalar_lea.vmem %s1423_s10, 8192  ;;  %s1339_s27 = smov [#allocation4]  }
  0x34   : > { %p1260_p3 = scmp.ne.s32.totalorder %s1423_s10, %s1259_s26  ;;  %s1263_s28 = sshll.u32 %s1339_s27, 4  ;;  %s1264_s28 = int_to_ptr.vmem [resolvable:$false] %s1263_s28 }
  0x35   : > { %s1265_s29 = scalar_lea.vmem %s1264_s28, 16384  ;;  %p1266_p8 = scmp.lt.s32.totalorder %s1423_s10, %s1264_s28 }
  0x36   : > { %p1261_p5 = pnand %p1260_p3, %p1399_p4  ;;  %p1267_p9 = scmp.lt.s32.totalorder %s1265_s29, %s1259_s26 }
  0x38   : > { %p1262_p7 = pneg %p1261_p5  ;;  %p1268_p11 = por %p1267_p9, %p1266_p8 }
  0x3a   : > { %p1269_p12 = pnand %p1268_p11, %p1262_p7 }
  0x3c   : > { %1272 = shalt.err (!%p1269_p12)
}
  0x3d   : > { %s1340_s30 = smov 256   ;;  %s1341_s4 = smov 16  }
  0x3e   : > { %1104 = dma.hbm_to_vmem [thread:$0]  (%p1399_p4), %s1421_s8, 8192, %s1423_s10, %s1425_s11, %s1340_s30, %s1340_s30, %s1341_s4  }
  0x3f PF: > { %p1027_p10 = scmp.ge.s32.totalorder %s1337_s15, 1  ;;  %p246_p13 = scmp.lt.s32.totalorder %s1337_s15, 5 }
  0x41   : > { %p247_p0 = pnand %p1027_p10, %p246_p13 }
  0x42   : > { %s253_s5 = sand.u32 (!%p247_p0), 1, %s1329_s13  }
  0x43   : > { %250 = sbr.rel (%p247_p0) target bundleno = 417 (0x1a1), region = 66  ;;  %s1028_s7 = sshll.u32 (!%p247_p0), %s253_s5, 9 }
  0x44   : > { %s1103_s6 = smul.u32 (!%p247_p0), 112, %s253_s5  ;;  %s260_s12 = scalar_lea.sflag (!%p247_p0), [#allocation5], %s253_s5 }
  0x45   : > { %s1454_s18 = scalar_lea.vmem (!%p247_p0), [#allocation4], %s1028_s7 }
  0x46   : > { %s1452_s9 = scalar_lea.vmem (!%p247_p0), [#allocation3], %s1103_s6 }
  0x4a   : > { %1316 = dma.done.wait (%p1404_p6), %s260_s12, 8192  }
  0x4b   : > { %1318 = vsyncadd (%p1404_p6), %s260_s12, 4294959104  ;;  %p1029_p4 = scmp.ne.s32.totalorder %s1384_s16, 0 }
  0x4c   : > { %v1342_v14 = vmov (!%p1029_p4), 0.0  }
  0x4d   : > { %290 = sbr.rel (%p1029_p4) target bundleno = 84 (0x54), region = 78  ;;  %291 = vst [vmem:[#allocation2] sm:$0xff] (!%p1029_p4), %v1342_v14 }
  0x54 PF: > { %v1149_v15 = vld [vmem:[%s1454_s18 + $0x4] ss:$16 sps:$4 sm:$0xff]   ;;  %v1151_v16 = vld [vmem:[%s1454_s18 + $0xc] ss:$16 sps:$4 sm:$0xff]   ;;  %v1153_v17 = vld [vmem:[%s1454_s18] ss:$16 sps:$4 sm:$0xff]  }
  0x55   : > { %791 = vmatprep.subr.bf16.mxu0 %v1149_v15  ;;  %v1154_v18 = vld [vmem:[%s1454_s18 + $0x8] ss:$16 sps:$4 sm:$0xff]   ;;  %832 = vmatprep.subr.bf16.mxu1 %v1151_v16  ;;  %v1155_v19 = vld [vmem:[%s1454_s18 + $0x24] ss:$16 sps:$4 sm:$0xff]   ;;  %v1157_v20 = vld [vmem:[%s1454_s18 + $0x2c] ss:$16 sps:$4 sm:$0xff]  }
  0x56   : > { %792 = vmatpush1.bf16.msra.mxu0 %v1153_v17  ;;  %833 = vmatpush1.bf16.msra.mxu1 %v1154_v18  ;;  %v1159_v21 = vld [vmem:[%s1454_s18 + $0x20] ss:$16 sps:$4 sm:$0xff]   ;;  %v1160_v22 = vld [vmem:[%s1454_s18 + $0x28] ss:$16 sps:$4 sm:$0xff]   ;;  %v1161_v23 = vld [vmem:[%s1454_s18 + $0x44] ss:$16 sps:$4 sm:$0xff]  }
  0x57   : > { %793 = vmatprep.subr.bf16.mxu0 %v1155_v19  ;;  %834 = vmatprep.subr.bf16.mxu1 %v1157_v20  ;;  %v1163_v24 = vld [vmem:[%s1454_s18 + $0x4c] ss:$16 sps:$4 sm:$0xff]   ;;  %v1165_v25 = vld [vmem:[%s1454_s18 + $0x40] ss:$16 sps:$4 sm:$0xff]   ;;  %v1166_v26 = vld [vmem:[%s1454_s18 + $0x48] ss:$16 sps:$4 sm:$0xff]  }
  0x58   : > { %v1167_v27 = vld [vmem:[%s1454_s18 + $0x64] ss:$16 sps:$4 sm:$0xff]   ;;  %v1169_v28 = vld [vmem:[%s1454_s18 + $0x6c] ss:$16 sps:$4 sm:$0xff]   ;;  %v1171_v29 = vld [vmem:[%s1454_s18 + $0x60] ss:$16 sps:$4 sm:$0xff]  }
  0x59   : > { %v1172_v30 = vld [vmem:[%s1454_s18 + $0x68] ss:$16 sps:$4 sm:$0xff]   ;;  %v1173_v31 = vld [vmem:[%s1454_s18 + $0x84] ss:$16 sps:$4 sm:$0xff]   ;;  %v1175_v32 = vld [vmem:[%s1454_s18 + $0x8c] ss:$16 sps:$4 sm:$0xff]  }
  0x5a   : > { %794 = vmatpush1.bf16.msra.mxu0 %v1159_v21  ;;  %835 = vmatpush1.bf16.msra.mxu1 %v1160_v22  ;;  %v1177_v33 = vld [vmem:[%s1454_s18 + $0x80] ss:$16 sps:$4 sm:$0xff]   ;;  %v1178_v34 = vld [vmem:[%s1454_s18 + $0x88] ss:$16 sps:$4 sm:$0xff]   ;;  %v1179_v35 = vld [vmem:[%s1454_s18 + $0xa4] ss:$16 sps:$4 sm:$0xff]  }
  0x5b   : > { %795 = vmatprep.subr.bf16.mxu0 %v1161_v23  ;;  %836 = vmatprep.subr.bf16.mxu1 %v1163_v24  ;;  %v1181_v36 = vld [vmem:[%s1454_s18 + $0xac] ss:$16 sps:$4 sm:$0xff]   ;;  %v1183_v37 = vld [vmem:[%s1454_s18 + $0xa0] ss:$16 sps:$4 sm:$0xff]   ;;  %v1184_v38 = vld [vmem:[%s1454_s18 + $0xa8] ss:$16 sps:$4 sm:$0xff]  }
  0x5c   : > { %v1185_v39 = vld [vmem:[%s1454_s18 + $0xc4] ss:$16 sps:$4 sm:$0xff]   ;;  %v1187_v40 = vld [vmem:[%s1454_s18 + $0xcc] ss:$16 sps:$4 sm:$0xff]   ;;  %v1189_v41 = vld [vmem:[%s1454_s18 + $0xc0] ss:$16 sps:$4 sm:$0xff]  }
  0x5d   : > { %v1190_v42 = vld [vmem:[%s1454_s18 + $0xc8] ss:$16 sps:$4 sm:$0xff]   ;;  %v1191_v43 = vld [vmem:[%s1454_s18 + $0xe4] ss:$16 sps:$4 sm:$0xff]   ;;  %v1193_v44 = vld [vmem:[%s1454_s18 + $0xec] ss:$16 sps:$4 sm:$0xff]  }
  0x5e   : > { %796 = vmatpush1.bf16.msra.mxu0 %v1165_v25  ;;  %837 = vmatpush1.bf16.msra.mxu1 %v1166_v26  ;;  %v1195_v45 = vld [vmem:[%s1454_s18 + $0xe0] ss:$16 sps:$4 sm:$0xff]   ;;  %v1196_v46 = vld [vmem:[%s1454_s18 + $0xe8] ss:$16 sps:$4 sm:$0xff]   ;;  %v1197_v47 = vld [vmem:[%s1454_s18 + $0x104] ss:$16 sps:$4 sm:$0xff]  }
  0x5f   : > { %797 = vmatprep.subr.bf16.mxu0 %v1167_v27  ;;  %838 = vmatprep.subr.bf16.mxu1 %v1169_v28  ;;  %v1199_v48 = vld [vmem:[%s1454_s18 + $0x10c] ss:$16 sps:$4 sm:$0xff]   ;;  %v1201_v49 = vld [vmem:[%s1454_s18 + $0x100] ss:$16 sps:$4 sm:$0xff]   ;;  %v1202_v50 = vld [vmem:[%s1454_s18 + $0x108] ss:$16 sps:$4 sm:$0xff]  }
  0x60   : > { %v1203_v51 = vld [vmem:[%s1454_s18 + $0x124] ss:$16 sps:$4 sm:$0xff]   ;;  %v1205_v52 = vld [vmem:[%s1454_s18 + $0x12c] ss:$16 sps:$4 sm:$0xff]   ;;  %v1207_v53 = vld [vmem:[%s1454_s18 + $0x120] ss:$16 sps:$4 sm:$0xff]  }
  0x61   : > { %v1208_v54 = vld [vmem:[%s1454_s18 + $0x128] ss:$16 sps:$4 sm:$0xff]   ;;  %v1209_v55 = vld [vmem:[%s1454_s18 + $0x144] ss:$16 sps:$4 sm:$0xff]   ;;  %v1211_v56 = vld [vmem:[%s1454_s18 + $0x14c] ss:$16 sps:$4 sm:$0xff]  }
  0x62   : > { %798 = vmatpush1.bf16.msra.mxu0 %v1171_v29  ;;  %839 = vmatpush1.bf16.msra.mxu1 %v1172_v30  ;;  %v1213_v57 = vld [vmem:[%s1454_s18 + $0x140] ss:$16 sps:$4 sm:$0xff]   ;;  %v1214_v58 = vld [vmem:[%s1454_s18 + $0x148] ss:$16 sps:$4 sm:$0xff]   ;;  %v1215_v59 = vld [vmem:[%s1454_s18 + $0x164] ss:$16 sps:$4 sm:$0xff]  }
  0x63   : > { %799 = vmatprep.subr.bf16.mxu0 %v1173_v31  ;;  %840 = vmatprep.subr.bf16.mxu1 %v1175_v32  ;;  %v1217_v60 = vld [vmem:[%s1454_s18 + $0x16c] ss:$16 sps:$4 sm:$0xff]   ;;  %v1219_v61 = vld [vmem:[%s1454_s18 + $0x160] ss:$16 sps:$4 sm:$0xff]   ;;  %v1220_v62 = vld [vmem:[%s1454_s18 + $0x168] ss:$16 sps:$4 sm:$0xff]  }
  0x64   : > { %v292_v63 = vld [vmem:[%s1452_s9] sm:$0xff]  ;;  %v293_v0 = vld [vmem:[%s1452_s9 + $0x8] sm:$0xff]  ;;  %v294_v3 = vld [vmem:[%s1452_s9 + $0x10] sm:$0xff]  ;;  %vm339_vm0 = vcmask 1040384   ;;  %vm464_vm1 = vcmask 1041409   ;;  %p1094_p6 = scmp.ne.s32.totalorder %s1384_s16, 3 }
  0x65   : > { %v1221_v1 = vld [vmem:[%s1454_s18 + $0x184] ss:$16 sps:$4 sm:$0xff]   ;;  %v1223_v2 = vld [vmem:[%s1454_s18 + $0x18c] ss:$16 sps:$4 sm:$0xff]   ;;  %v306_v9 = vunpack.c.l.bf16 %v292_v63  ;;  %v307_v10 = vunpack.c.h.bf16 %v292_v63  ;;  %v308_v11 = vunpack.c.l.bf16 %v293_v0  ;;  %v309_v12 = vunpack.c.h.bf16 %v293_v0  ;;  %v1225_v19 = vld [vmem:[%s1454_s18 + $0x180] ss:$16 sps:$4 sm:$0xff]  }
  0x66   : > { %800 = vmatpush1.bf16.msra.mxu0 %v1177_v33  ;;  %841 = vmatpush1.bf16.msra.mxu1 %v1178_v34  ;;  %v1515_v4 = vld [vmem:[%s1452_s9 + $0x18] sm:$0xff]  ;;  %v300_v6 = vld [vmem:[%s1452_s9 + $0x40] sm:$0xff]  ;;  %v301_v8 = vld [vmem:[%s1452_s9 + $0x48] sm:$0xff]  ;;  %v310_v22 = vunpack.c.l.bf16 %v294_v3  ;;  %v311_v23 = vunpack.c.h.bf16 %v294_v3 }
  0x67   : > { %801 = vmatprep.subr.bf16.mxu0 %v1179_v35  ;;  %842 = vmatprep.subr.bf16.mxu1 %v1181_v36  ;;  %v299_v5 = vld [vmem:[%s1452_s9 + $0x38] sm:$0xff]  ;;  %v1520_v7 = vld [vmem:[%s1452_s9 + $0x20] sm:$0xff]  ;;  %v1524_v13 = vld [vmem:[%s1452_s9 + $0x28] sm:$0xff]  ;;  %v322_v17 = vunpack.c.l.bf16 %v300_v6  ;;  %v323_v18 = vunpack.c.h.bf16 %v300_v6  ;;  %v312_v24 = vunpack.c.l.bf16 %v1515_v4  ;;  %v313_v25 = vunpack.c.h.bf16 %v1515_v4 }
  0x68   : > { %v302_v14 = vld [vmem:[%s1452_s9 + $0x50] sm:$0xff]  ;;  %v320_v15 = vunpack.c.l.bf16 %v299_v5  ;;  %v321_v16 = vunpack.c.h.bf16 %v299_v5  ;;  %v1226_v20 = vld [vmem:[%s1454_s18 + $0x188] ss:$16 sps:$4 sm:$0xff]   ;;  %v1229_v26 = vld [vmem:[%s1454_s18 + $0x1ac] ss:$16 sps:$4 sm:$0xff]   ;;  %v314_v29 = vunpack.c.l.bf16 %v1520_v7  ;;  %v315_v30 = vunpack.c.h.bf16 %v1520_v7 }
  0x69   : > { %v1227_v21 = vld [vmem:[%s1454_s18 + $0x1a4] ss:$16 sps:$4 sm:$0xff]   ;;  %v303_v28 = vld [vmem:[%s1452_s9 + $0x58] sm:$0xff]  ;;  %v324_v31 = vunpack.c.l.bf16 %v301_v8  ;;  %v325_v32 = vunpack.c.h.bf16 %v301_v8  ;;  %v316_v33 = vunpack.c.l.bf16 %v1524_v13  ;;  %v317_v34 = vunpack.c.h.bf16 %v1524_v13  ;;  %v1237_v63 = vld [vmem:[%s1454_s18 + $0x1c0] ss:$16 sps:$4 sm:$0xff]  }
  0x6a   : > { %802 = vmatpush1.bf16.msra.mxu0 %v1183_v37  ;;  %843 = vmatpush1.bf16.msra.mxu1 %v1184_v38  ;;  %v298_v27 = vld [vmem:[%s1452_s9 + $0x30] sm:$0x11]  ;;  %v326_v35 = vunpack.c.l.bf16 %v302_v14  ;;  %v348_v36 = vadd.f32 %v309_v12, %v307_v10  ;;  %v304_v37 = vld [vmem:[%s1452_s9 + $0x60] sm:$0xff]  ;;  %v305_v38 = vld [vmem:[%s1452_s9 + $0x68] sm:$0x11] }
  0x6b   : > { %803 = vmatprep.subr.bf16.mxu0 %v1185_v39  ;;  %844 = vmatprep.subr.bf16.mxu1 %v1187_v40  ;;  %v327_v39 = vunpack.c.h.bf16 %v302_v14  ;;  %v374_v40 = vadd.f32 %v323_v18, %v321_v16  ;;  %v1238_v0 = vld [vmem:[%s1454_s18 + $0x1c8] ss:$16 sps:$4 sm:$0xff]   ;;  %v1241_v3 = vld [vmem:[%s1454_s18 + $0x1ec] ss:$16 sps:$4 sm:$0xff]  }
  0x6c   : > { %v1244_v16 = vld [vmem:[%s1454_s18 + $0x1e8] ss:$16 sps:$4 sm:$0xff]  }
  0x6e   : > { %804 = vmatpush1.bf16.msra.mxu0 %v1189_v41  ;;  %845 = vmatpush1.bf16.msra.mxu1 %v1190_v42  ;;  %v334_v41 = vadd.f32 %v308_v11, %v306_v9  ;;  %v361_v42 = vadd.f32 %v322_v17, %v320_v15  ;;  %v1243_v15 = vld [vmem:[%s1454_s18 + $0x1e0] ss:$16 sps:$4 sm:$0xff]  }
  0x6f   : > { %805 = vmatprep.subr.bf16.mxu0 %v1191_v43  ;;  %846 = vmatprep.subr.bf16.mxu1 %v1193_v44  ;;  %v1231_v43 = vld [vmem:[%s1454_s18 + $0x1a0] ss:$16 sps:$4 sm:$0xff]   ;;  %v1232_v44 = vld [vmem:[%s1454_s18 + $0x1a8] ss:$16 sps:$4 sm:$0xff]  }
  0x72   : > { %806 = vmatpush1.bf16.msra.mxu0 %v1195_v45  ;;  %847 = vmatpush1.bf16.msra.mxu1 %v1196_v46  ;;  %v318_v45 = vunpack.c.l.bf16 %v298_v27  ;;  %v319_v46 = vunpack.c.h.bf16 %v298_v27 }
  0x73   : > { %807 = vmatprep.subr.bf16.mxu0 %v1197_v47  ;;  %848 = vmatprep.subr.bf16.mxu1 %v1199_v48  ;;  %v328_v47 = vunpack.c.l.bf16 %v303_v28  ;;  %v349_v48 = vadd.f32 %v348_v36, %v311_v23 }
  0x74   : > { %v353_v4 = vsel %vm339_vm0, %v319_v46, 0.0  ;;  %v340_v10 = vsel %vm339_vm0, %v318_v45, 0.0 }
  0x76   : > { %808 = vmatpush1.bf16.msra.mxu0 %v1201_v49  ;;  %849 = vmatpush1.bf16.msra.mxu1 %v1202_v50  ;;  %v1233_v49 = vld [vmem:[%s1454_s18 + $0x1c4] ss:$16 sps:$4 sm:$0xff]   ;;  %v1235_v50 = vld [vmem:[%s1454_s18 + $0x1cc] ss:$16 sps:$4 sm:$0xff]  }
  0x77   : > { %809 = vmatprep.subr.bf16.mxu0 %v1203_v51  ;;  %850 = vmatprep.subr.bf16.mxu1 %v1205_v52  ;;  %v329_v51 = vunpack.c.h.bf16 %v303_v28  ;;  %v375_v52 = vadd.f32 %v374_v40, %v325_v32 }
  0x7a   : > { %810 = vmatpush1.bf16.msra.mxu0 %v1207_v53  ;;  %851 = vmatpush1.bf16.msra.mxu1 %v1208_v54  ;;  %v335_v53 = vadd.f32 %v334_v41, %v310_v22  ;;  %v362_v54 = vadd.f32 %v361_v42, %v324_v31 }
  0x7b   : > { %811 = vmatprep.subr.bf16.mxu0 %v1209_v55  ;;  %852 = vmatprep.subr.bf16.mxu1 %v1211_v56  ;;  %v330_v55 = vunpack.c.l.bf16 %v304_v37  ;;  %v332_v56 = vunpack.c.l.bf16 %v305_v38 }
  0x7d   : > { %v366_v11 = vsel %vm339_vm0, %v332_v56, 0.0 }
  0x7e   : > { %812 = vmatpush1.bf16.msra.mxu0 %v1213_v57  ;;  %853 = vmatpush1.bf16.msra.mxu1 %v1214_v58  ;;  %v333_v57 = vunpack.c.h.bf16 %v305_v38  ;;  %v350_v58 = vadd.f32 %v349_v48, %v313_v25 }
  0x7f   : > { %813 = vmatprep.subr.bf16.mxu0 %v1215_v59  ;;  %854 = vmatprep.subr.bf16.mxu1 %v1217_v60  ;;  %v331_v59 = vunpack.c.h.bf16 %v304_v37  ;;  %v376_v60 = vadd.f32 %v375_v52, %v327_v39 }
  0x80   : > { %v379_v9 = vsel %vm339_vm0, %v333_v57, 0.0  ;;  %v1343_v57 = vmov 1983009808  }
  0x81   : > { %v377_v5 = vadd.f32 %v376_v60, %v329_v51 }
  0x82   : > { %814 = vmatpush1.bf16.msra.mxu0 %v1219_v61  ;;  %855 = vmatpush1.bf16.msra.mxu1 %v1220_v62  ;;  %v336_v61 = vadd.f32 %v335_v53, %v312_v24  ;;  %v363_v62 = vadd.f32 %v362_v54, %v326_v35 }
  0x83   : > { %815 = vmatprep.subr.bf16.mxu0 %v1221_v1  ;;  %856 = vmatprep.subr.bf16.mxu1 %v1223_v2  ;;  %v351_v1 = vadd.f32 %v350_v58, %v315_v30  ;;  %v1239_v2 = vld [vmem:[%s1454_s18 + $0x1e4] ss:$16 sps:$4 sm:$0xff]   ;;  %v378_v12 = vadd.f32 %v377_v5, %v331_v59  ;;  %v880_v58 = vunpack.c.l.s4 %v1343_v57  ;;  %v882_v59 = vlaneseq }
  0x84   : > { %v337_v6 = vadd.f32 %v336_v61, %v314_v29  ;;  %v364_v7 = vadd.f32 %v363_v62, %v328_v47 }
  0x85   : > { %v352_v8 = vadd.f32 %v351_v1, %v317_v34  ;;  %v380_v18 = vadd.f32 %v379_v9, %v378_v12  ;;  %v881_v60 = vunpack.c.0.s8 %v880_v58  ;;  %v883_v61 = vshrl.u32 %v882_v59, 7 }
  0x86   : > { %816 = vmatpush1.bf16.msra.mxu0 %v1225_v19  ;;  %857 = vmatpush1.bf16.msra.mxu1 %v1226_v20  ;;  %v338_v13 = vadd.f32 %v337_v6, %v316_v33  ;;  %v365_v14 = vadd.f32 %v364_v7, %v330_v55 }
  0x87   : > { %817 = vmatprep.subr.bf16.mxu0 %v1227_v21  ;;  %858 = vmatprep.subr.bf16.mxu1 %v1229_v26  ;;  %v354_v17 = vadd.f32 %v353_v4, %v352_v8  ;;  %v381_v22 = vrot.slane %v380_v18, 4 }
  0x88   : > { %v341_v19 = vadd.f32 %v340_v10, %v338_v13  ;;  %v367_v20 = vadd.f32 %v366_v11, %v365_v14  ;;  %v387_v11 = vld [vmem:[#allocation2] sm:$0xff] }
  0x89   : > { %v355_v21 = vrot.slane %v354_v17, 4  ;;  %v382_v26 = vadd.f32 %v381_v22, %v380_v18  ;;  %v902_v14 = vld [vmem:[%s1597_s2] sm:$0xf] (!%p1094_p6)  ;;  %v918_v18 = vsub.s32 (!%p1094_p6), 3, %v883_v61 }
  0x8a   : > { %818 = vmatpush1.bf16.msra.mxu0 %v1231_v43  ;;  %859 = vmatpush1.bf16.msra.mxu1 %v1232_v44  ;;  %v342_v23 = vrot.slane %v341_v19, 4  ;;  %v368_v24 = vrot.slane %v367_v20, 4 }
  0x8b   : > { %819 = vmatprep.subr.bf16.mxu0 %v1233_v49  ;;  %860 = vmatprep.subr.bf16.mxu1 %v1235_v50  ;;  %v356_v25 = vadd.f32 %v355_v21, %v354_v17  ;;  %v383_v30 = vrot.slane %v382_v26, 2  ;;  %v914_v17 = vsub.s32 (!%p1094_p6), 2, %v883_v61  ;;  %v919_v22 = vrot.slane (!%p1094_p6), %v902_v14, %v918_v18 }
  0x8c   : > { %v343_v27 = vadd.f32 %v342_v23, %v341_v19  ;;  %v369_v28 = vadd.f32 %v368_v24, %v367_v20 }
  0x8d   : > { %v357_v29 = vrot.slane %v356_v25, 2  ;;  %v384_v34 = vadd.f32 %v383_v30, %v382_v26  ;;  %v915_v21 = vrot.slane (!%p1094_p6), %v902_v14, %v914_v17 }
  0x8e   : > { %820 = vmatpush1.bf16.msra.mxu0 %v1237_v63  ;;  %861 = vmatpush1.bf16.msra.mxu1 %v1238_v0  ;;  %v344_v31 = vrot.slane %v343_v27, 2  ;;  %v370_v32 = vrot.slane %v369_v28, 2  ;;  %v884_v0 = vsub.s32 %v881_v60, %v883_v61 }
  0x8f   : > { %821 = vmatprep.subr.bf16.mxu0 %v1239_v2  ;;  %862 = vmatprep.subr.bf16.mxu1 %v1241_v3  ;;  %v358_v33 = vadd.f32 %v357_v29, %v356_v25  ;;  %v385_v38 = vrot.slane %v384_v34, 1  ;;  %v921_v24 = vcombine.low (!%p1094_p6), %v915_v21, %v919_v22 }
  0x90   : > { %v345_v35 = vadd.f32 %v344_v31, %v343_v27  ;;  %v371_v36 = vadd.f32 %v370_v32, %v369_v28 }
  0x91   : > { %v359_v37 = vrot.slane %v358_v33, 1  ;;  %v386_v42 = vadd.f32 %v385_v38, %v384_v34  ;;  %v935_v26 = vrot.slane (!%p1094_p6), %v921_v24, %v884_v0 }
  0x92   : > { %822 = vmatpush1.bf16.msra.mxu0 %v1243_v15  ;;  %863 = vmatpush1.bf16.msra.mxu1 %v1244_v16  ;;  %v346_v39 = vrot.slane %v345_v35, 1  ;;  %v372_v40 = vrot.slane %v371_v36, 1  ;;  %v906_v15 = vsub.s32 (!%p1094_p6), 0, %v883_v61  ;;  %v910_v16 = vsub.s32 (!%p1094_p6), 1, %v883_v61 }
  0x93   : > { %v360_v41 = vadd.f32 %v359_v37, %v358_v33  ;;  %v391_v46 = vpack.c.bf16 %v386_v42, %v386_v42 }
  0x94   : > { %v347_v43 = vadd.f32 %v346_v39, %v345_v35  ;;  %v373_v44 = vadd.f32 %v372_v40, %v371_v36  ;;  %v907_v19 = vrot.slane (!%p1094_p6), %v902_v14, %v906_v15  ;;  %v911_v20 = vrot.slane (!%p1094_p6), %v902_v14, %v910_v16 }
  0x95   : > { %v389_v45 = vpack.c.bf16 %v360_v41, %v360_v41  ;;  %v463_v50 = vunpack.c.l.b16 %v391_v46 }
  0x96   : > { %v388_v47 = vpack.c.bf16 %v347_v43, %v347_v43  ;;  %v390_v48 = vpack.c.bf16 %v373_v44, %v373_v44  ;;  %v920_v23 = vcombine.low (!%p1094_p6), %v907_v19, %v911_v20 }
  0x97   : > { %v461_v49 = vunpack.c.l.b16 %v389_v45 }
  0x98   : > { %v460_v51 = vunpack.c.l.b16 %v388_v47  ;;  %v462_v52 = vunpack.c.l.b16 %v390_v48  ;;  %v928_v25 = vrot.slane (!%p1094_p6), %v920_v23, %v884_v0 }
  0x99   : > { %v466_v53 = vsel %vm464_vm1, %v463_v50, %v461_v49 }
  0x9a   : > { %v465_v54 = vsel %vm464_vm1, %v462_v52, %v460_v51  ;;  %v468_v55 = vpack.c.b16 %v466_v53, %v466_v53  ;;  %v936_v28 = vcombine.low (!%p1094_p6), %v928_v25, %v935_v26 }
  0x9b   : > { %v467_v56 = vpack.c.b16 %v465_v54, %v465_v54 }
  0x9c   : > { %823 = vmatprep.mubr.bf16.mxu0 %v468_v55  ;;  %864 = vmatprep.mubr.bf16.mxu1 %v468_v55 }
  0x9d   : > { %824 = vmatmul.mubr.bf16.vlgmr.msra.gmra.mrb[0].mxu0 %v467_v56  ;;  %865 = vmatmul.mubr.bf16.vlgmr.msra.gmra.mrb[0].mxu1 %v467_v56 }
 0x170   : > { %v825_v62 = vpop.f32.mrb[0].mxu0  ;;  %v866_v63 = vpop.f32.mrb[0].mxu1 }
 0x171   : > { %v827_v1 = vpop.f32.mrb[1].mxu0  ;;  %v868_v2 = vpop.f32.mrb[1].mxu1 }
 0x172   : > { %v877_v3 = vcombine.low %v825_v62, %v827_v1  ;;  %v878_v4 = vcombine.low %v866_v63, %v868_v2  ;;  %v829_v5 = vpop.f32.mrb[2].mxu0  ;;  %v870_v6 = vpop.f32.mrb[2].mxu1 }
 0x173   : > { %v830_v7 = vpop.f32.mrb[3].mxu0  ;;  %v871_v8 = vpop.f32.mrb[3].mxu1 }
 0x174   : > { %v885_v9 = vrot.slane %v877_v3, %v884_v0  ;;  %v892_v10 = vrot.slane %v878_v4, %v884_v0  ;;  %900 = sbr.rel (%p1094_p6) target bundleno = 392 (0x188), region = 82 }
 0x176   : > { %v893_v12 = vcombine.low %v885_v9, %v892_v10 }
 0x178   : > { %v895_v13 = vadd.f32 %v893_v12, %v387_v11 }
 0x17a   : > { %896 = vst [vmem:[#allocation2] sm:$0xff] %v895_v13 }
 0x181   : > { %v901_v27 = vld [vmem:[#allocation2] sm:$0xff] }
 0x182   : > { %v938_v29 = vadd.f32 %v936_v28, %v901_v27 }
 0x184   : > { %vm939_vm2 = vcmp.ge.f32.partialorder %v938_v29, 0.0  ;;  %v940_v30 = vmul.f32 0.1, %v938_v29 }
 0x186   : > { %v941_v31 = vsel %vm939_vm2, %v938_v29, %v940_v30 }
 0x187   : > { %942 = vst [vmem:[#allocation7] sm:$0xff] %v941_v31 }
 0x188 PF: > { %p1110_p1 = scmp.eq.s32.totalorder %s1384_s16, 3  ;;  %s1344_s22 = smov [#allocation7]  }
 0x189   : > { %s950_s8 = sshll.u32 %s1344_s22, 4  ;;  %s951_s8 = int_to_ptr.vmem [resolvable:$true] %s950_s8 }
 0x18a   : > { %s1273_s10 = scalar_lea.vmem %s951_s8, 128  ;;  %p1280_p7 = scmp.lt.s32.totalorder %s951_s8, %s951_s8 }
 0x18b   : > { %p1274_p2 = scmp.ne.s32.totalorder %s951_s8, %s1273_s10  ;;  %p1281_p8 = scmp.lt.s32.totalorder %s1273_s10, %s1273_s10 }
 0x18d   : > { %p1275_p3 = pnand %p1274_p2, %p1110_p1  ;;  %p1282_p9 = por %p1281_p8, %p1280_p7 }
 0x18f   : > { %p1276_p5 = pneg %p1275_p3 }
 0x191   : > { %p1283_p11 = pnand %p1282_p9, %p1276_p5 }
 0x193   : > { %1286 = shalt.err (!%p1283_p11)
}
 0x194   : > { %s1287_s23 = scalar_lea.hbm %s1598_s3, 128 }
 0x195   : > { %p1288_p12 = scmp.ne.s32.totalorder %s1598_s3, %s1287_s23  ;;  %p1293_p0 = scmp.lt.u32.totalorder %s1287_s23, %s1598_s3 }
 0x197   : > { %p1289_p10 = pnand %p1288_p12, %p1110_p1 }
 0x199   : > { %p1290_p13 = pneg %p1289_p10 }
 0x19b   : > { %p1295_p4 = pnand %p1293_p0, %p1290_p13 }
 0x19d   : > { %1298 = shalt.err (!%p1295_p4)
}
 0x19e   : > { %1107 = dma.vmem_to_hbm [thread:$0]  (%p1110_p1), %s951_s8, 128, %s1598_s3, [#allocation6]  }
 0x19f   : > { %1320 = dma.done.wait (%p1110_p1), [#allocation6], 128  }
 0x1a0   : > { %1322 = vsyncadd (%p1110_p1), [#allocation6], 4294967168 }
 0x1a1 PF: > { %p14_p6 = scmp.ge.s32.totalorder %s1387_s17, 6   ;;  %s1601_s12 = smov %s1329_s13 }
 0x1a2   : > { %s1602_s13 = smov %s1333_s14  ;;  %s1603_s14 = smov %s1397_s20 }
 0x1a3   : > { %s1604_s15 = smov %s1387_s17  ;;  %16 = sbr.rel (!%p14_p6) target bundleno = 4 (0x4), region = 123 }
 0x1aa   :  { %963 = vsyncpa [#allocation5], 1 }
 0x1ab   :  { %965 = vsyncpa [#allocation5 + $0x1], 1 }
 0x1ac   :  { %966 = vsyncpa [#allocation6], 1 }
 0x1ad   :  { %968 = vsyncpa [#allocation6 + $0x1], 1 }

</bundles_post_ra>
